<compile_context>
chip_gen: v7x
topology: tpu7x:2x2x1
jax: 0.10.0
libtpu: 0.0.40
codegen_flags: <defaults>
</compile_context>

<pallas_src>
import functools

import jax
import jax.numpy as jnp
import numpy as np
from jax.experimental import pallas as pl
from jax.experimental.pallas import tpu as pltpu

LN_EPS = 1e-5          # PyTorch nn.LayerNorm default
NEG_INF = -1000000.0   # same constant as the reference implementation


# ---------------------------------------------------------------------------
# Kernel 1: DynamicPosBias (lane-dense, VPU-only, single invocation)
# ---------------------------------------------------------------------------
def _mac(w, b, x):
    """Unrolled VPU broadcast-MAC:  (Cout, Cin) x (Cin, M) -> (Cout, M)."""
    cout, cin = w.shape
    m = x.shape[1]
    acc = jnp.broadcast_to(b, (cout, m))
    for c in range(cin):                       # statically unrolled (cin <= 8)
        acc = acc + w[:, c:c + 1] * x[c:c + 1, :]
    return acc


def _ln_features(h, gamma, beta):
    """LayerNorm over the feature axis (axis 0 = sublanes); gamma/beta: (F, 1)."""
    mu = jnp.mean(h, axis=0, keepdims=True)
    var = jnp.mean((h - mu) * (h - mu), axis=0, keepdims=True)
    return (h - mu) * jax.lax.rsqrt(var + LN_EPS) * gamma + beta


def _dpb_kernel(b_ref,
                wp_ref, bp_ref,
                g1_ref, be1_ref, w1_ref, b1_ref,
                g2_ref, be2_ref, w2_ref, b2_ref,
                g3_ref, be3_ref, w3_ref, b3_ref,
                o_ref):
    x = b_ref[...]                                              # (2, M) lane-dense

    h = _mac(wp_ref[...], bp_ref[...], x)                       # pos_proj
    h = _mac(w1_ref[...], b1_ref[...],
             jnp.maximum(_ln_features(h, g1_ref[...], be1_ref[...]), 0.0))
    h = _mac(w2_ref[...], b2_ref[...],
             jnp.maximum(_ln_features(h, g2_ref[...], be2_ref[...]), 0.0))
    h = _mac(w3_ref[...], b3_ref[...],
             jnp.maximum(_ln_features(h, g3_ref[...], be3_ref[...]), 0.0))

    o_ref[...] = h.astype(o_ref.dtype)                          # (num_heads, M)


def _dpb_pallas(biases_t, p):
    """biases_t: (2, M) float32  ->  (num_heads, M) float32 lane-dense table."""
    nH = p["dpb_w3"].shape[0]
    M = biases_t.shape[1]
    args = (biases_t,
            p["dpb_wp"], p["dpb_bp"],
            p["dpb_g1"], p["dpb_be1"], p["dpb_w1"], p["dpb_b1"],
            p["dpb_g2"], p["dpb_be2"], p["dpb_w2"], p["dpb_b2"],
            p["dpb_g3"], p["dpb_be3"], p["dpb_w3"], p["dpb_b3"])
    # TODO(synk): the 15 tiny parameter operands could be packed into one flat
    # f32 buffer to shave a few DMA descriptors (low priority, kernel is tiny).
    return pl.pallas_call(
        _dpb_kernel,
        out_shape=jax.ShapeDtypeStruct((nH, M), jnp.float32),
    )(*args)


def _dpb_reference(biases_t, p):
    """Pure-JAX DynamicPosBias (row-major layout), reference path."""
    h = biases_t.T @ p["dpb_wp"].T + p["dpb_bp"][:, 0]
    for g, be, w, b in ((p["dpb_g1"], p["dpb_be1"], p["dpb_w1"], p["dpb_b1"]),
                        (p["dpb_g2"], p["dpb_be2"], p["dpb_w2"], p["dpb_b2"]),
                        (p["dpb_g3"], p["dpb_be3"], p["dpb_w3"], p["dpb_b3"])):
        mu = jnp.mean(h, -1, keepdims=True)
        var = jnp.mean((h - mu) ** 2, -1, keepdims=True)
        h = (h - mu) * jax.lax.rsqrt(var + LN_EPS) * g[:, 0] + be[:, 0]
        h = jnp.maximum(h, 0.0)
        h = h @ w.T + b[:, 0]
    return h.T                                                   # (num_heads, M)


def _dpb_numpy(biases_t, p):
    """Exact float32 numpy reference for the standalone kernel check."""
    f32 = lambda k: np.asarray(p[k], np.float32)
    h = biases_t.T @ f32("dpb_wp").T + f32("dpb_bp")[:, 0]
    for g, be, w, b in (("dpb_g1", "dpb_be1", "dpb_w1", "dpb_b1"),
                        ("dpb_g2", "dpb_be2", "dpb_w2", "dpb_b2"),
                        ("dpb_g3", "dpb_be3", "dpb_w3", "dpb_b3")):
        mu = h.mean(-1, keepdims=True)
        var = ((h - mu) ** 2).mean(-1, keepdims=True)
        h = (h - mu) / np.sqrt(var + LN_EPS) * f32(g)[:, 0] + f32(be)[:, 0]
        h = np.maximum(h, 0.0)
        h = h @ f32(w).T + f32(b)[:, 0]
    return h.T


# ---------------------------------------------------------------------------
# Kernel 2: fused grouped attention core (Bt window groups per grid step)
# ---------------------------------------------------------------------------
def _attn_kernel(q_ref, k_ref, v_ref, bias_ref, kmask_ref, o_ref, *,
                 num_heads, head_dim):
    q = q_ref[...]              # (Bt, N, C) bf16, queries already scaled
    k = k_ref[...]              # (Bt, N, C) bf16
    v = v_ref[...]              # (Bt, N, C) bf16
    kmask = kmask_ref[...]      # (Bt, N)    f32, key-only additive mask

    heads = []
    for h in range(num_heads):                      # statically unrolled
        lo = h * head_dim
        hi = lo + head_dim
        qh = q[:, :, lo:hi]                          # static minor-dim slices
        kh = k[:, :, lo:hi]
        vh = v[:, :, lo:hi]

        # MXU: bf16 inputs, f32 accumulate
        s = jnp.einsum("bqd,bkd->bqk", qh, kh,
                       preferred_element_type=jnp.float32)       # (Bt, N, N)
        # f32 softmax math: bias (per head, resident) + key-only mask
        s = s + bias_ref[h][None, :, :] + kmask[:, None, :]
        s = s - jnp.max(s, axis=-1, keepdims=True)
        e = jnp.exp(s)
        denom = jnp.sum(e, axis=-1, keepdims=True)

        # un-normalized PV matmul, then scale the (Bt, N, Dh) output
        oh = jnp.einsum("bqk,bkd->bqd", e.astype(vh.dtype), vh,
                        preferred_element_type=jnp.float32)
        heads.append(oh * pl.reciprocal(denom, approx=True))     # ~1e-3 rel err

    # single lane-dense (Bt, N, C) store
    o_ref[...] = jnp.concatenate(heads, axis=-1).astype(o_ref.dtype)


def _attention_core_pallas(q, k, v, rel_bias, kmask, num_heads):
    """q/k/v: (B_, N, C) f32 (q pre-scaled); rel_bias: (nH, N, N) f32;
    kmask: (B_, N) f32 key-only additive mask.  Returns (B_, N, C) f32."""
    B_, N, C = q.shape
    Dh = C // num_heads

    Bt = min(8, B_)                         # groups per grid step
    Bp = -(-B_ // Bt) * Bt                  # pad group count to multiple of Bt
    pad = Bp - B_
    if pad:
        zpad3 = ((0, pad), (0, 0), (0, 0))
        q = jnp.pad(q, zpad3)
        k = jnp.pad(k, zpad3)
        v = jnp.pad(v, zpad3)
        kmask = jnp.pad(kmask, ((0, pad), (0, 0)))

    qb = q.astype(jnp.bfloat16)
    kb = k.astype(jnp.bfloat16)
    vb = v.astype(jnp.bfloat16)

    kern = functools.partial(_attn_kernel, num_heads=num_heads, head_dim=Dh)
    grp_spec = pl.BlockSpec((Bt, N, C), lambda b: (b, 0, 0))
    out = pl.pallas_call(
        kern,
        out_shape=jax.ShapeDtypeStruct((Bp, N, C), jnp.float32),
        grid=(Bp // Bt,),
        in_specs=[grp_spec, grp_spec, grp_spec,
                  pl.BlockSpec((num_heads, N, N), lambda b: (0, 0, 0)),  # resident bias
                  pl.BlockSpec((Bt, N), lambda b: (b, 0))],              # key-only mask
        out_specs=grp_spec,
        compiler_params=pltpu.CompilerParams(
            dimension_semantics=("parallel",)),
    )(qb, kb, vb, rel_bias, kmask)
    return out[:B_] if pad else out


def _attention_core_reference(q, k, v, rel_bias, kmask, num_heads):
    """Pure-JAX f32 reference with identical signature."""
    B_, N, C = q.shape
    Dh = C // num_heads
    qh = q.reshape(B_, N, num_heads, Dh).transpose(0, 2, 1, 3)
    kh = k.reshape(B_, N, num_heads, Dh).transpose(0, 2, 1, 3)
    vh = v.reshape(B_, N, num_heads, Dh).transpose(0, 2, 1, 3)
    s = jnp.einsum("bhnd,bhmd->bhnm", qh, kh)
    s = s + rel_bias[None, :, :, :] + kmask[:, None, None, :]
    probs = jax.nn.softmax(s, axis=-1)
    o = jnp.einsum("bhnm,bhmd->bhnd", probs, vh)
    return o.transpose(0, 2, 1, 3).reshape(B_, N, C)


# ---------------------------------------------------------------------------
# Attention module (QKV / bias gather / core / proj)
# ---------------------------------------------------------------------------
def _attention(x, Gh, Gw, key_mask, p, num_heads, dpb_fn, core_fn):
    B_, N, C = x.shape
    nH = num_heads
    Dh = C // nH
    scale = Dh ** -0.5

    qkv = x @ p["qkv_w"] + p["qkv_b"]                            # (B_, N, 3C)
    q = qkv[..., :C] * scale                                     # pre-scaled queries
    k = qkv[..., C:2 * C]
    v = qkv[..., 2 * C:]

    # static relative-coordinate tables (numpy, baked at trace time)
    ph = np.arange(1 - Gh, Gh, dtype=np.float32)
    pw = np.arange(1 - Gw, Gw, dtype=np.float32)
    bias_grid = np.stack(np.meshgrid(ph, pw, indexing="ij")).reshape(2, -1)
    biases_t = jnp.asarray(bias_grid)                            # (2, M)

    ch = np.arange(Gh)
    cw = np.arange(Gw)
    coords = np.stack(np.meshgrid(ch, cw, indexing="ij")).reshape(2, -1)     # (2, N)
    rel = (coords[:, :, None] - coords[:, None, :]).transpose(1, 2, 0).copy()
    rel[:, :, 0] += Gh - 1
    rel[:, :, 1] += Gw - 1
    rel[:, :, 0] *= 2 * Gw - 1
    rel_idx = jnp.asarray(rel.sum(-1).reshape(-1).astype(np.int32))          # (N*N,)

    pos_table = dpb_fn(biases_t, p)                              # (nH, M) lane-dense
    rel_bias = pos_table[:, rel_idx].reshape(nH, N, N)           # gather once

    if key_mask is None:
        kmask_full = jnp.zeros((B_, N), jnp.float32)
    else:
        nP = key_mask.shape[0]                                   # group g uses g % nP
        kmask_full = jnp.broadcast_to(key_mask[None], (B_ // nP, nP, N)).reshape(B_, N)

    out = core_fn(q, k, v, rel_bias, kmask_full, nH)             # (B_, N, C)
    return out @ p["proj_w"] + p["proj_b"]


# ---------------------------------------------------------------------------
# STransformerBlock forward
# ---------------------------------------------------------------------------
def _layer_norm_rows(x, g, b):
    mu = jnp.mean(x, -1, keepdims=True)
    var = jnp.mean((x - mu) ** 2, -1, keepdims=True)
    return (x - mu) * jax.lax.rsqrt(var + LN_EPS) * g + b


def st_transformer_block(x, params, *, x_size, num_heads, window_size=7,
                         interval=8, ds_flag=1, use_pallas=True):
    H, W = x_size
    B, L, C = x.shape
    assert L == H * W, "input feature has wrong size"

    if min(H, W) <= window_size:
        ds_flag = 0
        window_size = min(H, W)

    dpb_fn = _dpb_pallas if use_pallas else _dpb_reference
    core_fn = _attention_core_pallas if use_pallas else _attention_core_reference

    shortcut = x
    x = _layer_norm_rows(x, params["n1_g"], params["n1_b"])
    x = x.reshape(B, H, W, C)

    size_par = interval if ds_flag == 1 else window_size
    pad_r = (size_par - W % size_par) % size_par
    pad_b = (size_par - H % size_par) % size_par
    x = jnp.pad(x, ((0, 0), (0, pad_b), (0, pad_r), (0, 0)))
    Hd, Wd = H + pad_b, W + pad_r

    # static pad indicator (1 where padded) — mask depends on key position only
    pad_ind = np.zeros((Hd, Wd), np.float32)
    if pad_b > 0:
        pad_ind[-pad_b:, :] = 1.0
    if pad_r > 0:
        pad_ind[:, -pad_r:] = 1.0

    if ds_flag == 0:                                             # dense attention
        G = window_size
        Gh = Gw = G
        nP = (Hd // G) * (Wd // G)
        xg = x.reshape(B, Hd // G, G, Wd // G, G, C).transpose(0, 1, 3, 2, 4, 5)
        xg = xg.reshape(B * nP, G * G, C)
        if pad_r > 0 or pad_b > 0:
            m = pad_ind.reshape(Hd // G, G, Wd // G, G).transpose(0, 2, 1, 3)
            m = m.reshape(nP, G * G)
            key_mask = jnp.asarray(np.where(m > 0, NEG_INF, 0.0).astype(np.float32))
        else:
            key_mask = None
    else:                                                        # sparse attention
        I = interval
        Gh, Gw = Hd // I, Wd // I
        nP = I * I
        xg = x.reshape(B, Gh, I, Gw, I, C).transpose(0, 2, 4, 1, 3, 5)
        xg = xg.reshape(B * nP, Gh * Gw, C)
        if pad_r > 0 or pad_b > 0:
            m = pad_ind.reshape(Gh, I, Gw, I).transpose(1, 3, 0, 2)
            m = m.reshape(nP, Gh * Gw)
            key_mask = jnp.asarray(np.where(m > 0, NEG_INF, 0.0).astype(np.float32))
        else:
            key_mask = None

    xg = _attention(xg, Gh, Gw, key_mask, params, num_heads, dpb_fn, core_fn)

    if ds_flag == 0:
        G = window_size
        xm = xg.reshape(B, Hd // G, Wd // G, G, G, C).transpose(0, 1, 3, 2, 4, 5)
    else:
        I = interval
        Gh, Gw = Hd // I, Wd // I
        xm = xg.reshape(B, I, I, Gh, Gw, C).transpose(0, 3, 1, 4, 2, 5)
    xm = xm.reshape(B, Hd, Wd, C)
    if pad_r > 0 or pad_b > 0:
        xm = xm[:, :H, :W, :]
    xm = xm.reshape(B, H * W, C)

    x = shortcut + xm                                            # drop_path = identity

    # MLP branch: LayerNorm -> fc1 -> GELU -> fc2 (dense GEMMs left to XLA)
    y = _layer_norm_rows(x, params["n2_g"], params["n2_b"])
    y = y @ params["fc1_w"] + params["fc1_b"]
    y = jax.nn.gelu(y, approximate=False)
    y = y @ params["fc2_w"] + params["fc2_b"]
    return x + y


# ---------------------------------------------------------------------------
# Deterministic synthetic parameters
# ---------------------------------------------------------------------------
def init_params(key, dim, num_heads, mlp_ratio=4.0):
    pos_dim = (dim // 4) // 4          # DynamicPosBias(dim // 4).pos_dim
    hidden = int(dim * mlp_ratio)
    keys = jax.random.split(key, 13)
    s = 0.2

    def dense(k, cin, cout):           # used as x @ W + b
        kw, kb = jax.random.split(k)
        return (jax.random.normal(kw, (cin, cout), jnp.float32) * s,
                jax.random.normal(kb, (cout,), jnp.float32) * s)

    def dpb_lin(k, cin, cout):         # PyTorch layout (out, in), bias (out, 1)
        kw, kb = jax.random.split(k)
        return (jax.random.normal(kw, (cout, cin), jnp.float32) * s,
                jax.random.normal(kb, (cout, 1), jnp.float32) * s)

    def dpb_ln(k, f):
        kg, kb = jax.random.split(k)
        return (1.0 + 0.1 * jax.random.normal(kg, (f, 1), jnp.float32),
                0.1 * jax.random.normal(kb, (f, 1), jnp.float32))

    def ln(k, f):
        kg, kb = jax.random.split(k)
        return (1.0 + 0.1 * jax.random.normal(kg, (f,), jnp.float32),
                0.1 * jax.random.normal(kb, (f,), jnp.float32))

    p = {}
    p["n1_g"], p["n1_b"] = ln(keys[0], dim)
    p["n2_g"], p["n2_b"] = ln(keys[1], dim)
    p["qkv_w"], p["qkv_b"] = dense(keys[2], dim, dim * 3)
    p["proj_w"], p["proj_b"] = dense(keys[3], dim, dim)
    p["fc1_w"], p["fc1_b"] = dense(keys[4], dim, hidden)
    p["fc2_w"], p["fc2_b"] = dense(keys[5], hidden, dim)
    p["dpb_wp"], p["dpb_bp"] = dpb_lin(keys[6], 2, pos_dim)
    p["dpb_w1"], p["dpb_b1"] = dpb_lin(keys[7], pos_dim, pos_dim)
    p["dpb_w2"], p["dpb_b2"] = dpb_lin(keys[8], pos_dim, pos_dim)
    p["dpb_w3"], p["dpb_b3"] = dpb_lin(keys[9], pos_dim, num_heads)
    p["dpb_g1"], p["dpb_be1"] = dpb_ln(keys[10], pos_dim)
    p["dpb_g2"], p["dpb_be2"] = dpb_ln(keys[11], pos_dim)
    p["dpb_g3"], p["dpb_be3"] = dpb_ln(keys[12], pos_dim)
    return p


# ---------------------------------------------------------------------------
if __name__ == "__main__":
    B, H, W, C, NH = 2, 16, 16, 64, 4
    WINDOW, INTERVAL = 7, 8

    key = jax.random.PRNGKey(0)
    params = init_params(key, C, NH, mlp_ratio=4.0)
    x = 0.5 * jax.random.normal(jax.random.fold_in(key, 123), (B, H * W, C),
                                jnp.float32)

    # --- standalone check of the DynamicPosBias kernel (exact f32 reference)
    G = WINDOW
    ph = np.arange(1 - G, G, dtype=np.float32)
    bias_grid = np.stack(np.meshgrid(ph, ph, indexing="ij")).reshape(2, -1)  # (2, 169)
    pos_kernel = jax.block_until_ready(
        jax.jit(_dpb_pallas)(jnp.asarray(bias_grid), params))
    pos_ref = _dpb_numpy(bias_grid, params)
    np.testing.assert_allclose(np.asarray(pos_kernel), pos_ref,
                               rtol=2e-3, atol=1e-3)

    # --- full STransformerBlock forward: Pallas path vs pure-JAX reference
    #     dense branch (ds_flag=0, exercises padding + key mask) and
    #     sparse branch (ds_flag=1, interval divides H/W -> no mask)
    for ds_flag in (0, 1):
        fwd = jax.jit(functools.partial(
            st_transformer_block, x_size=(H, W), num_heads=NH,
            window_size=WINDOW, interval=INTERVAL, ds_flag=ds_flag,
            use_pallas=True))
        ref = jax.jit(functools.partial(
            st_transformer_block, x_size=(H, W), num_heads=NH,
            window_size=WINDOW, interval=INTERVAL, ds_flag=ds_flag,
            use_pallas=False))

        out = jax.block_until_ready(fwd(x, params))
        exp = jax.block_until_ready(ref(x, params))

        assert out.shape == (B, H * W, C)
        # Loose tolerance absorbs bf16 MXU inputs + approx reciprocal in the
        # Pallas attention core vs the f32 XLA reference einsums.
        rel_err = float(jnp.linalg.norm(out - exp) / jnp.linalg.norm(exp))
        assert rel_err < 5e-2, f"ds_flag={ds_flag}: relative L2 error {rel_err}"

    print("KERNEL_OK")
</pallas_src>

<mosaic_0001>
module attributes {stable_mosaic.version = 11 : i64} {
  func.func @_dpb_kernel(%arg0: memref<2x169xf32, #tpu.memory_space<vmem>>, %arg1: memref<4x2xf32, #tpu.memory_space<vmem>>, %arg2: memref<4x1xf32, #tpu.memory_space<vmem>>, %arg3: memref<4x1xf32, #tpu.memory_space<vmem>>, %arg4: memref<4x1xf32, #tpu.memory_space<vmem>>, %arg5: memref<4x4xf32, #tpu.memory_space<vmem>>, %arg6: memref<4x1xf32, #tpu.memory_space<vmem>>, %arg7: memref<4x1xf32, #tpu.memory_space<vmem>>, %arg8: memref<4x1xf32, #tpu.memory_space<vmem>>, %arg9: memref<4x4xf32, #tpu.memory_space<vmem>>, %arg10: memref<4x1xf32, #tpu.memory_space<vmem>>, %arg11: memref<4x1xf32, #tpu.memory_space<vmem>>, %arg12: memref<4x1xf32, #tpu.memory_space<vmem>>, %arg13: memref<4x4xf32, #tpu.memory_space<vmem>>, %arg14: memref<4x1xf32, #tpu.memory_space<vmem>>, %arg15: memref<4x169xf32, #tpu.memory_space<vmem>>) attributes {dimension_semantics = [], scalar_prefetch = 0 : i64, scratch_operands = 0 : i64, tpu.core_type = #tpu.core_type<tc>} {
    %c0 = arith.constant 0 : index
    %c0_0 = arith.constant 0 : index
    %0 = vector.load %arg0[%c0, %c0_0] : memref<2x169xf32, #tpu.memory_space<vmem>>, vector<2x169xf32>
    %c0_1 = arith.constant 0 : index
    %c0_2 = arith.constant 0 : index
    %1 = vector.load %arg1[%c0_1, %c0_2] : memref<4x2xf32, #tpu.memory_space<vmem>>, vector<4x2xf32>
    %c0_3 = arith.constant 0 : index
    %c0_4 = arith.constant 0 : index
    %2 = vector.load %arg2[%c0_3, %c0_4] : memref<4x1xf32, #tpu.memory_space<vmem>>, vector<4x1xf32>
    %3 = vector.shape_cast %2 : vector<4x1xf32> to vector<4x1xf32>
    %4 = vector.broadcast %3 : vector<4x1xf32> to vector<4x169xf32>
    %5 = vector.extract_strided_slice %1 {offsets = [0, 0], sizes = [4, 1], strides = [1, 1]} : vector<4x2xf32> to vector<4x1xf32>
    %6 = vector.extract_strided_slice %0 {offsets = [0, 0], sizes = [1, 169], strides = [1, 1]} : vector<2x169xf32> to vector<1x169xf32>
    %7 = vector.broadcast %5 : vector<4x1xf32> to vector<4x169xf32>
    %8 = vector.broadcast %6 : vector<1x169xf32> to vector<4x169xf32>
    %9 = arith.mulf %7, %8 : vector<4x169xf32>
    %10 = arith.addf %4, %9 : vector<4x169xf32>
    %11 = vector.extract_strided_slice %1 {offsets = [0, 1], sizes = [4, 1], strides = [1, 1]} : vector<4x2xf32> to vector<4x1xf32>
    %12 = vector.extract_strided_slice %0 {offsets = [1, 0], sizes = [1, 169], strides = [1, 1]} : vector<2x169xf32> to vector<1x169xf32>
    %13 = vector.broadcast %11 : vector<4x1xf32> to vector<4x169xf32>
    %14 = vector.broadcast %12 : vector<1x169xf32> to vector<4x169xf32>
    %15 = arith.mulf %13, %14 : vector<4x169xf32>
    %16 = arith.addf %10, %15 : vector<4x169xf32>
    %c0_5 = arith.constant 0 : index
    %c0_6 = arith.constant 0 : index
    %17 = vector.load %arg5[%c0_5, %c0_6] : memref<4x4xf32, #tpu.memory_space<vmem>>, vector<4x4xf32>
    %c0_7 = arith.constant 0 : index
    %c0_8 = arith.constant 0 : index
    %18 = vector.load %arg6[%c0_7, %c0_8] : memref<4x1xf32, #tpu.memory_space<vmem>>, vector<4x1xf32>
    %c0_9 = arith.constant 0 : index
    %c0_10 = arith.constant 0 : index
    %19 = vector.load %arg3[%c0_9, %c0_10] : memref<4x1xf32, #tpu.memory_space<vmem>>, vector<4x1xf32>
    %c0_11 = arith.constant 0 : index
    %c0_12 = arith.constant 0 : index
    %20 = vector.load %arg4[%c0_11, %c0_12] : memref<4x1xf32, #tpu.memory_space<vmem>>, vector<4x1xf32>
    %cst = arith.constant dense<0.000000e+00> : vector<169xf32>
    %21 = vector.multi_reduction <add>, %16, %cst [0] : vector<4x169xf32> to vector<169xf32>
    %22 = vector.shape_cast %21 : vector<169xf32> to vector<1x169xf32>
    %cst_13 = arith.constant 4.000000e+00 : f32
    %23 = vector.broadcast %cst_13 : f32 to vector<1x169xf32>
    %24 = arith.divf %22, %23 : vector<1x169xf32>
    %25 = vector.broadcast %24 : vector<1x169xf32> to vector<4x169xf32>
    %26 = arith.subf %16, %25 : vector<4x169xf32>
    %27 = vector.broadcast %24 : vector<1x169xf32> to vector<4x169xf32>
    %28 = arith.subf %16, %27 : vector<4x169xf32>
    %29 = arith.mulf %26, %28 : vector<4x169xf32>
    %cst_14 = arith.constant dense<0.000000e+00> : vector<169xf32>
    %30 = vector.multi_reduction <add>, %29, %cst_14 [0] : vector<4x169xf32> to vector<169xf32>
    %31 = vector.shape_cast %30 : vector<169xf32> to vector<1x169xf32>
    %cst_15 = arith.constant 4.000000e+00 : f32
    %32 = vector.broadcast %cst_15 : f32 to vector<1x169xf32>
    %33 = arith.divf %31, %32 : vector<1x169xf32>
    %34 = vector.broadcast %24 : vector<1x169xf32> to vector<4x169xf32>
    %35 = arith.subf %16, %34 : vector<4x169xf32>
    %cst_16 = arith.constant 9.99999974E-6 : f32
    %36 = vector.broadcast %cst_16 : f32 to vector<1x169xf32>
    %37 = arith.addf %33, %36 : vector<1x169xf32>
    %38 = math.rsqrt %37 : vector<1x169xf32>
    %39 = vector.broadcast %38 : vector<1x169xf32> to vector<4x169xf32>
    %40 = arith.mulf %35, %39 : vector<4x169xf32>
    %41 = vector.broadcast %19 : vector<4x1xf32> to vector<4x169xf32>
    %42 = arith.mulf %40, %41 : vector<4x169xf32>
    %43 = vector.broadcast %20 : vector<4x1xf32> to vector<4x169xf32>
    %44 = arith.addf %42, %43 : vector<4x169xf32>
    %cst_17 = arith.constant 0.000000e+00 : f32
    %45 = vector.broadcast %cst_17 : f32 to vector<4x169xf32>
    %46 = arith.maximumf %44, %45 : vector<4x169xf32>
    %47 = vector.shape_cast %18 : vector<4x1xf32> to vector<4x1xf32>
    %48 = vector.broadcast %47 : vector<4x1xf32> to vector<4x169xf32>
    %49 = vector.extract_strided_slice %17 {offsets = [0, 0], sizes = [4, 1], strides = [1, 1]} : vector<4x4xf32> to vector<4x1xf32>
    %50 = vector.extract_strided_slice %46 {offsets = [0, 0], sizes = [1, 169], strides = [1, 1]} : vector<4x169xf32> to vector<1x169xf32>
    %51 = vector.broadcast %49 : vector<4x1xf32> to vector<4x169xf32>
    %52 = vector.broadcast %50 : vector<1x169xf32> to vector<4x169xf32>
    %53 = arith.mulf %51, %52 : vector<4x169xf32>
    %54 = arith.addf %48, %53 : vector<4x169xf32>
    %55 = vector.extract_strided_slice %17 {offsets = [0, 1], sizes = [4, 1], strides = [1, 1]} : vector<4x4xf32> to vector<4x1xf32>
    %56 = vector.extract_strided_slice %46 {offsets = [1, 0], sizes = [1, 169], strides = [1, 1]} : vector<4x169xf32> to vector<1x169xf32>
    %57 = vector.broadcast %55 : vector<4x1xf32> to vector<4x169xf32>
    %58 = vector.broadcast %56 : vector<1x169xf32> to vector<4x169xf32>
    %59 = arith.mulf %57, %58 : vector<4x169xf32>
    %60 = arith.addf %54, %59 : vector<4x169xf32>
    %61 = vector.extract_strided_slice %17 {offsets = [0, 2], sizes = [4, 1], strides = [1, 1]} : vector<4x4xf32> to vector<4x1xf32>
    %62 = vector.extract_strided_slice %46 {offsets = [2, 0], sizes = [1, 169], strides = [1, 1]} : vector<4x169xf32> to vector<1x169xf32>
    %63 = vector.broadcast %61 : vector<4x1xf32> to vector<4x169xf32>
    %64 = vector.broadcast %62 : vector<1x169xf32> to vector<4x169xf32>
    %65 = arith.mulf %63, %64 : vector<4x169xf32>
    %66 = arith.addf %60, %65 : vector<4x169xf32>
    %67 = vector.extract_strided_slice %17 {offsets = [0, 3], sizes = [4, 1], strides = [1, 1]} : vector<4x4xf32> to vector<4x1xf32>
    %68 = vector.extract_strided_slice %46 {offsets = [3, 0], sizes = [1, 169], strides = [1, 1]} : vector<4x169xf32> to vector<1x169xf32>
    %69 = vector.broadcast %67 : vector<4x1xf32> to vector<4x169xf32>
    %70 = vector.broadcast %68 : vector<1x169xf32> to vector<4x169xf32>
    %71 = arith.mulf %69, %70 : vector<4x169xf32>
    %72 = arith.addf %66, %71 : vector<4x169xf32>
    %c0_18 = arith.constant 0 : index
    %c0_19 = arith.constant 0 : index
    %73 = vector.load %arg9[%c0_18, %c0_19] : memref<4x4xf32, #tpu.memory_space<vmem>>, vector<4x4xf32>
    %c0_20 = arith.constant 0 : index
    %c0_21 = arith.constant 0 : index
    %74 = vector.load %arg10[%c0_20, %c0_21] : memref<4x1xf32, #tpu.memory_space<vmem>>, vector<4x1xf32>
    %c0_22 = arith.constant 0 : index
    %c0_23 = arith.constant 0 : index
    %75 = vector.load %arg7[%c0_22, %c0_23] : memref<4x1xf32, #tpu.memory_space<vmem>>, vector<4x1xf32>
    %c0_24 = arith.constant 0 : index
    %c0_25 = arith.constant 0 : index
    %76 = vector.load %arg8[%c0_24, %c0_25] : memref<4x1xf32, #tpu.memory_space<vmem>>, vector<4x1xf32>
    %cst_26 = arith.constant dense<0.000000e+00> : vector<169xf32>
    %77 = vector.multi_reduction <add>, %72, %cst_26 [0] : vector<4x169xf32> to vector<169xf32>
    %78 = vector.shape_cast %77 : vector<169xf32> to vector<1x169xf32>
    %cst_27 = arith.constant 4.000000e+00 : f32
    %79 = vector.broadcast %cst_27 : f32 to vector<1x169xf32>
    %80 = arith.divf %78, %79 : vector<1x169xf32>
    %81 = vector.broadcast %80 : vector<1x169xf32> to vector<4x169xf32>
    %82 = arith.subf %72, %81 : vector<4x169xf32>
    %83 = vector.broadcast %80 : vector<1x169xf32> to vector<4x169xf32>
    %84 = arith.subf %72, %83 : vector<4x169xf32>
    %85 = arith.mulf %82, %84 : vector<4x169xf32>
    %cst_28 = arith.constant dense<0.000000e+00> : vector<169xf32>
    %86 = vector.multi_reduction <add>, %85, %cst_28 [0] : vector<4x169xf32> to vector<169xf32>
    %87 = vector.shape_cast %86 : vector<169xf32> to vector<1x169xf32>
    %cst_29 = arith.constant 4.000000e+00 : f32
    %88 = vector.broadcast %cst_29 : f32 to vector<1x169xf32>
    %89 = arith.divf %87, %88 : vector<1x169xf32>
    %90 = vector.broadcast %80 : vector<1x169xf32> to vector<4x169xf32>
    %91 = arith.subf %72, %90 : vector<4x169xf32>
    %cst_30 = arith.constant 9.99999974E-6 : f32
    %92 = vector.broadcast %cst_30 : f32 to vector<1x169xf32>
    %93 = arith.addf %89, %92 : vector<1x169xf32>
    %94 = math.rsqrt %93 : vector<1x169xf32>
    %95 = vector.broadcast %94 : vector<1x169xf32> to vector<4x169xf32>
    %96 = arith.mulf %91, %95 : vector<4x169xf32>
    %97 = vector.broadcast %75 : vector<4x1xf32> to vector<4x169xf32>
    %98 = arith.mulf %96, %97 : vector<4x169xf32>
    %99 = vector.broadcast %76 : vector<4x1xf32> to vector<4x169xf32>
    %100 = arith.addf %98, %99 : vector<4x169xf32>
    %cst_31 = arith.constant 0.000000e+00 : f32
    %101 = vector.broadcast %cst_31 : f32 to vector<4x169xf32>
    %102 = arith.maximumf %100, %101 : vector<4x169xf32>
    %103 = vector.shape_cast %74 : vector<4x1xf32> to vector<4x1xf32>
    %104 = vector.broadcast %103 : vector<4x1xf32> to vector<4x169xf32>
    %105 = vector.extract_strided_slice %73 {offsets = [0, 0], sizes = [4, 1], strides = [1, 1]} : vector<4x4xf32> to vector<4x1xf32>
    %106 = vector.extract_strided_slice %102 {offsets = [0, 0], sizes = [1, 169], strides = [1, 1]} : vector<4x169xf32> to vector<1x169xf32>
    %107 = vector.broadcast %105 : vector<4x1xf32> to vector<4x169xf32>
    %108 = vector.broadcast %106 : vector<1x169xf32> to vector<4x169xf32>
    %109 = arith.mulf %107, %108 : vector<4x169xf32>
    %110 = arith.addf %104, %109 : vector<4x169xf32>
    %111 = vector.extract_strided_slice %73 {offsets = [0, 1], sizes = [4, 1], strides = [1, 1]} : vector<4x4xf32> to vector<4x1xf32>
    %112 = vector.extract_strided_slice %102 {offsets = [1, 0], sizes = [1, 169], strides = [1, 1]} : vector<4x169xf32> to vector<1x169xf32>
    %113 = vector.broadcast %111 : vector<4x1xf32> to vector<4x169xf32>
    %114 = vector.broadcast %112 : vector<1x169xf32> to vector<4x169xf32>
    %115 = arith.mulf %113, %114 : vector<4x169xf32>
    %116 = arith.addf %110, %115 : vector<4x169xf32>
    %117 = vector.extract_strided_slice %73 {offsets = [0, 2], sizes = [4, 1], strides = [1, 1]} : vector<4x4xf32> to vector<4x1xf32>
    %118 = vector.extract_strided_slice %102 {offsets = [2, 0], sizes = [1, 169], strides = [1, 1]} : vector<4x169xf32> to vector<1x169xf32>
    %119 = vector.broadcast %117 : vector<4x1xf32> to vector<4x169xf32>
    %120 = vector.broadcast %118 : vector<1x169xf32> to vector<4x169xf32>
    %121 = arith.mulf %119, %120 : vector<4x169xf32>
    %122 = arith.addf %116, %121 : vector<4x169xf32>
    %123 = vector.extract_strided_slice %73 {offsets = [0, 3], sizes = [4, 1], strides = [1, 1]} : vector<4x4xf32> to vector<4x1xf32>
    %124 = vector.extract_strided_slice %102 {offsets = [3, 0], sizes = [1, 169], strides = [1, 1]} : vector<4x169xf32> to vector<1x169xf32>
    %125 = vector.broadcast %123 : vector<4x1xf32> to vector<4x169xf32>
    %126 = vector.broadcast %124 : vector<1x169xf32> to vector<4x169xf32>
    %127 = arith.mulf %125, %126 : vector<4x169xf32>
    %128 = arith.addf %122, %127 : vector<4x169xf32>
    %c0_32 = arith.constant 0 : index
    %c0_33 = arith.constant 0 : index
    %129 = vector.load %arg13[%c0_32, %c0_33] : memref<4x4xf32, #tpu.memory_space<vmem>>, vector<4x4xf32>
    %c0_34 = arith.constant 0 : index
    %c0_35 = arith.constant 0 : index
    %130 = vector.load %arg14[%c0_34, %c0_35] : memref<4x1xf32, #tpu.memory_space<vmem>>, vector<4x1xf32>
    %c0_36 = arith.constant 0 : index
    %c0_37 = arith.constant 0 : index
    %131 = vector.load %arg11[%c0_36, %c0_37] : memref<4x1xf32, #tpu.memory_space<vmem>>, vector<4x1xf32>
    %c0_38 = arith.constant 0 : index
    %c0_39 = arith.constant 0 : index
    %132 = vector.load %arg12[%c0_38, %c0_39] : memref<4x1xf32, #tpu.memory_space<vmem>>, vector<4x1xf32>
    %cst_40 = arith.constant dense<0.000000e+00> : vector<169xf32>
    %133 = vector.multi_reduction <add>, %128, %cst_40 [0] : vector<4x169xf32> to vector<169xf32>
    %134 = vector.shape_cast %133 : vector<169xf32> to vector<1x169xf32>
    %cst_41 = arith.constant 4.000000e+00 : f32
    %135 = vector.broadcast %cst_41 : f32 to vector<1x169xf32>
    %136 = arith.divf %134, %135 : vector<1x169xf32>
    %137 = vector.broadcast %136 : vector<1x169xf32> to vector<4x169xf32>
    %138 = arith.subf %128, %137 : vector<4x169xf32>
    %139 = vector.broadcast %136 : vector<1x169xf32> to vector<4x169xf32>
    %140 = arith.subf %128, %139 : vector<4x169xf32>
    %141 = arith.mulf %138, %140 : vector<4x169xf32>
    %cst_42 = arith.constant dense<0.000000e+00> : vector<169xf32>
    %142 = vector.multi_reduction <add>, %141, %cst_42 [0] : vector<4x169xf32> to vector<169xf32>
    %143 = vector.shape_cast %142 : vector<169xf32> to vector<1x169xf32>
    %cst_43 = arith.constant 4.000000e+00 : f32
    %144 = vector.broadcast %cst_43 : f32 to vector<1x169xf32>
    %145 = arith.divf %143, %144 : vector<1x169xf32>
    %146 = vector.broadcast %136 : vector<1x169xf32> to vector<4x169xf32>
    %147 = arith.subf %128, %146 : vector<4x169xf32>
    %cst_44 = arith.constant 9.99999974E-6 : f32
    %148 = vector.broadcast %cst_44 : f32 to vector<1x169xf32>
    %149 = arith.addf %145, %148 : vector<1x169xf32>
    %150 = math.rsqrt %149 : vector<1x169xf32>
    %151 = vector.broadcast %150 : vector<1x169xf32> to vector<4x169xf32>
    %152 = arith.mulf %147, %151 : vector<4x169xf32>
    %153 = vector.broadcast %131 : vector<4x1xf32> to vector<4x169xf32>
    %154 = arith.mulf %152, %153 : vector<4x169xf32>
    %155 = vector.broadcast %132 : vector<4x1xf32> to vector<4x169xf32>
    %156 = arith.addf %154, %155 : vector<4x169xf32>
    %cst_45 = arith.constant 0.000000e+00 : f32
    %157 = vector.broadcast %cst_45 : f32 to vector<4x169xf32>
    %158 = arith.maximumf %156, %157 : vector<4x169xf32>
    %159 = vector.shape_cast %130 : vector<4x1xf32> to vector<4x1xf32>
    %160 = vector.broadcast %159 : vector<4x1xf32> to vector<4x169xf32>
    %161 = vector.extract_strided_slice %129 {offsets = [0, 0], sizes = [4, 1], strides = [1, 1]} : vector<4x4xf32> to vector<4x1xf32>
    %162 = vector.extract_strided_slice %158 {offsets = [0, 0], sizes = [1, 169], strides = [1, 1]} : vector<4x169xf32> to vector<1x169xf32>
    %163 = vector.broadcast %161 : vector<4x1xf32> to vector<4x169xf32>
    %164 = vector.broadcast %162 : vector<1x169xf32> to vector<4x169xf32>
    %165 = arith.mulf %163, %164 : vector<4x169xf32>
    %166 = arith.addf %160, %165 : vector<4x169xf32>
    %167 = vector.extract_strided_slice %129 {offsets = [0, 1], sizes = [4, 1], strides = [1, 1]} : vector<4x4xf32> to vector<4x1xf32>
    %168 = vector.extract_strided_slice %158 {offsets = [1, 0], sizes = [1, 169], strides = [1, 1]} : vector<4x169xf32> to vector<1x169xf32>
    %169 = vector.broadcast %167 : vector<4x1xf32> to vector<4x169xf32>
    %170 = vector.broadcast %168 : vector<1x169xf32> to vector<4x169xf32>
    %171 = arith.mulf %169, %170 : vector<4x169xf32>
    %172 = arith.addf %166, %171 : vector<4x169xf32>
    %173 = vector.extract_strided_slice %129 {offsets = [0, 2], sizes = [4, 1], strides = [1, 1]} : vector<4x4xf32> to vector<4x1xf32>
    %174 = vector.extract_strided_slice %158 {offsets = [2, 0], sizes = [1, 169], strides = [1, 1]} : vector<4x169xf32> to vector<1x169xf32>
    %175 = vector.broadcast %173 : vector<4x1xf32> to vector<4x169xf32>
    %176 = vector.broadcast %174 : vector<1x169xf32> to vector<4x169xf32>
    %177 = arith.mulf %175, %176 : vector<4x169xf32>
    %178 = arith.addf %172, %177 : vector<4x169xf32>
    %179 = vector.extract_strided_slice %129 {offsets = [0, 3], sizes = [4, 1], strides = [1, 1]} : vector<4x4xf32> to vector<4x1xf32>
    %180 = vector.extract_strided_slice %158 {offsets = [3, 0], sizes = [1, 169], strides = [1, 1]} : vector<4x169xf32> to vector<1x169xf32>
    %181 = vector.broadcast %179 : vector<4x1xf32> to vector<4x169xf32>
    %182 = vector.broadcast %180 : vector<1x169xf32> to vector<4x169xf32>
    %183 = arith.mulf %181, %182 : vector<4x169xf32>
    %184 = arith.addf %178, %183 : vector<4x169xf32>
    %c0_46 = arith.constant 0 : index
    %c0_47 = arith.constant 0 : index
    %185 = vector.load %arg15[%c0_46, %c0_47] : memref<4x169xf32, #tpu.memory_space<vmem>>, vector<4x169xf32>
    tpu.vector_store %arg15[%c0_46, %c0_47], %184 {strides = array<i32>} : memref<4x169xf32, #tpu.memory_space<vmem>>, vector<4x169xf32>,
    return
  }
}

</mosaic_0001>

<bundles_post_ra>
// kernel: _dpb_pallas.1
= control target key start
LH: loop header
LB: loop body
LE: loop exit
PB: predicated region body
PF: predicated region fallthrough
CT: control target
= control target key end

     0   :  { %v591_v1 = vmov 0   ;;  %v592_v2 = vmov 1   ;;  %s786_s0 = inlined_call_operand.vmem [shape: f32[2,169], index: 0, kind: input, shape index: {}]   ;;  %s787_s1 = inlined_call_operand.vmem [shape: f32[4,2], index: 1, kind: input, shape index: {}]   ;;  %s788_s2 = inlined_call_operand.vmem [shape: f32[4,1], index: 2, kind: input, shape index: {}]   ;;  %s789_s3 = inlined_call_operand.vmem [shape: f32[4,1], index: 3, kind: input, shape index: {}]   ;;  %s790_s4 = inlined_call_operand.vmem [shape: f32[4,1], index: 4, kind: input, shape index: {}]   ;;  %s791_s5 = inlined_call_operand.vmem [shape: f32[4,4], index: 5, kind: input, shape index: {}]   ;;  %s792_s6 = inlined_call_operand.vmem [shape: f32[4,1], index: 6, kind: input, shape index: {}]   ;;  %s793_s7 = inlined_call_operand.vmem [shape: f32[4,1], index: 7, kind: input, shape index: {}]   ;;  %s794_s8 = inlined_call_operand.vmem [shape: f32[4,1], index: 8, kind: input, shape index: {}]   ;;  %s795_s9 = inlined_call_operand.vmem [shape: f32[4,4], index: 9, kind: input, shape index: {}]   ;;  %s796_s10 = inlined_call_operand.vmem [shape: f32[4,1], index: 10, kind: input, shape index: {}]   ;;  %s797_s11 = inlined_call_operand.vmem [shape: f32[4,1], index: 11, kind: input, shape index: {}]   ;;  %s798_s12 = inlined_call_operand.vmem [shape: f32[4,1], index: 12, kind: input, shape index: {}]   ;;  %s799_s13 = inlined_call_operand.vmem [shape: f32[4,4], index: 13, kind: input, shape index: {}]   ;;  %s800_s14 = inlined_call_operand.vmem [shape: f32[4,1], index: 14, kind: input, shape index: {}]   ;;  %s801_s15 = inlined_call_operand.hbm [shape: f32[4,169], index: 15, kind: output, shape index: {}]  }
   0x1   :  { %v52_v0 = vld [vmem:[%s787_s1] sm:$0xf]  ;;  %538 = vset.pattern.permute.xlu0 %v591_v1  ;;  %539 = vset.pattern.permute.xlu1 %v592_v2 }
   0x2   :  { %61 = vperm.xlu0 %538, %v52_v0   ;;  %88 = vperm.xlu1 %539, %v52_v0   ;;  %v53_v3 = vld [vmem:[%s788_s2] sm:$0xf] }
   0x3   :  { %v115_v4 = vld [vmem:[%s789_s3] sm:$0xf] }
   0x4   :  { %20 = vsyncpa [#allocation3], 0  ;;  %v116_v5 = vld [vmem:[%s790_s4] sm:$0xf]  ;;  %v593_v8 = vmov 2   ;;  %v594_v9 = vmov 3   ;;  %v65_v18 = vlaneseq }
   0x5   :  { %v113_v6 = vld [vmem:[%s791_s5] sm:$0xf]  ;;  %vm117_vm0 = vcmask 1043456   ;;  %vm125_vm1 = vcmask 330752   ;;  %vm516_vm2 = vcmask 334852  }
   0x6   :  { %56 = vperm.xlu0 %538, %v53_v3   ;;  %540 = vset.pattern.permute.xlu1 %v591_v1  ;;  %v114_v7 = vld [vmem:[%s792_s6] sm:$0xf]  ;;  %v66_v19 = vshrl.u32 %v65_v18, 7  ;;  %vm517_vm3 = vmor %vm516_vm2, %vm117_vm0 }
   0x7   :  { %164 = vperm.xlu1 %540, %v115_v4   ;;  %v251_v10 = vld [vmem:[%s794_s8] sm:$0xf] }
   0x8   :  { %v250_v11 = vld [vmem:[%s793_s7] sm:$0xf]  ;;  %v718_v20 = vsub.s32 0, %v66_v19  ;;  %v720_v21 = vsub.s32 2, %v66_v19  ;;  %v722_v22 = vsub.s32 1, %v66_v19  ;;  %v724_v23 = vsub.s32 3, %v66_v19 }
   0x9   :  { %v248_v12 = vld [vmem:[%s795_s9] sm:$0xf] }
   0xa   :  { %171 = vperm.xlu0 %538, %v116_v5   ;;  %v249_v13 = vld [vmem:[%s796_s10] sm:$0xf] }
   0xb   :  { %185 = vperm.xlu1 %540, %v113_v6   ;;  %v383_v14 = vld [vmem:[%s798_s12] sm:$0xf] }
   0xc   :  { %v382_v15 = vld [vmem:[%s797_s11] sm:$0xf] }
   0xd   :  { %v380_v16 = vld [vmem:[%s799_s13] sm:$0xf] }
   0xe   :  { %180 = vperm.xlu0 %538, %v114_v7   ;;  %v381_v17 = vld [vmem:[%s800_s14] sm:$0xf] }
   0xf   :  { %541 = vset.pattern.permute.xlu1 %v592_v2  ;;  %v51_v24 = vld [vmem:[%s786_s0] sm:$0xf]  ;;  %s595_s0 = smov [#allocation2]  }
  0x10   :  { %201 = vperm.xlu1 %541, %v113_v6   ;;  %v68_v25 = vrot.slane %v51_v24, %v718_v20  ;;  %v72_v26 = vrot.slane %v51_v24, %v720_v21  ;;  %v94_v27 = vrot.slane %v51_v24, %v722_v22  ;;  %v98_v28 = vrot.slane %v51_v24, %v724_v23  ;;  %s525_s13 = sshll.u32 %s595_s0, 4  ;;  %s526_s13 = int_to_ptr.vmem [resolvable:$true] %s525_s13 }
  0x11   :  { %s567_s14 = scalar_lea.vmem %s526_s13, 128  ;;  %p572_p1 = scmp.lt.s32.totalorder %s526_s13, %s526_s13 }
  0x12   :  { %542 = vset.pattern.permute.xlu0 %v593_v8  ;;  %v78_v29 = vrot.slane %v68_v25, %v718_v20  ;;  %v82_v30 = vrot.slane %v72_v26, %v718_v20  ;;  %v104_v31 = vrot.slane %v94_v27, %v722_v22  ;;  %v108_v32 = vrot.slane %v98_v28, %v722_v22  ;;  %p568_p0 = scmp.ne.s32.totalorder %s526_s13, %s567_s14  ;;  %p573_p2 = scmp.lt.s32.totalorder %s567_s14, %s567_s14 }
  0x13   :  { %217 = vperm.xlu0 %542, %v113_v6  }
  0x14   :  { %543 = vset.pattern.permute.xlu1 %v594_v9  ;;  %p574_p3 = por %p573_p2, %p572_p1 }
  0x15   :  { %233 = vperm.xlu1 %543, %v113_v6  }
  0x16   :  { %p575_p4 = pnand %p574_p3, %p568_p0 }
  0x17   :  { %545 = vset.pattern.permute.xlu0 %v591_v1 }
  0x18   :  { %303 = vperm.xlu0 %545, %v251_v10  }
  0x19   :  { %544 = vset.pattern.permute.xlu1 %v591_v1 }
  0x1a   :  { %296 = vperm.xlu1 %544, %v250_v11  }
  0x1c   :  { %546 = vset.pattern.permute.xlu0 %v592_v2 }
  0x1d   :  { %333 = vperm.xlu0 %546, %v248_v12  }
  0x1e   :  { %317 = vperm.xlu1 %544, %v248_v12  }
  0x21   :  { %549 = vset.pattern.permute.xlu0 %v591_v1 }
  0x22   :  { %312 = vperm.xlu1 %544, %v249_v13   ;;  %428 = vperm.xlu0 %549, %v382_v15  }
  0x26   :  { %547 = vset.pattern.permute.xlu1 %v593_v8  ;;  %444 = vperm.xlu0 %549, %v381_v17  }
  0x27   :  { %349 = vperm.xlu1 %547, %v248_v12  }
  0x2a   :  { %552 = vset.pattern.permute.xlu0 %v593_v8 }
  0x2b   :  { %548 = vset.pattern.permute.xlu1 %v594_v9  ;;  %481 = vperm.xlu0 %552, %v380_v16  }
  0x2c   :  { %365 = vperm.xlu1 %548, %v248_v12  }
  0x2f   :  { %554 = vset.pattern.permute.xlu0 %v594_v9 }
  0x30   :  { %550 = vset.pattern.permute.xlu1 %v591_v1 }
  0x31   :  { %435 = vperm.xlu1 %550, %v383_v14  }
  0x35   :  { %449 = vperm.xlu1 %550, %v380_v16  }
  0x39   :  { %551 = vset.pattern.permute.xlu1 %v592_v2 }
  0x3a   :  { %465 = vperm.xlu1 %551, %v380_v16  }
  0x3e   :  { %553 = vset.pattern.permute.xlu1 %v594_v9 }
  0x3f   :  { %497 = vperm.xlu1 %553, %v380_v16  }
  0x81   :  { %v62_v33 = vpop.permute.xlu0 %61  ;;  %v89_v34 = vpop.permute.xlu1 %88 }
  0x82   :  { %v83_v35 = vmul.f32 %v78_v29, %v62_v33  ;;  %v84_v36 = vmul.f32 %v82_v30, %v62_v33  ;;  %v109_v37 = vmul.f32 %v104_v31, %v89_v34  ;;  %v110_v38 = vmul.f32 %v108_v32, %v89_v34 }
  0x85   :  { %v57_v39 = vpop.permute.xlu0 %56 }
  0x86   :  { %v85_v40 = vadd.f32 %v83_v35, %v57_v39  ;;  %v86_v41 = vadd.f32 %v84_v36, %v57_v39  ;;  %v165_v18 = vpop.permute.xlu1 %164 }
  0x88   :  { %v111_v42 = vadd.f32 %v109_v37, %v85_v40  ;;  %v112_v43 = vadd.f32 %v110_v38, %v86_v41 }
  0x89   :  { %v172_v26 = vpop.permute.xlu0 %171 }
  0x8a   :  { %v118_v44 = vsel %vm117_vm0, %v111_v42, 0.0  ;;  %v126_v45 = vsel %vm125_vm1, %v112_v43, 0.0  ;;  %v186_v28 = vpop.permute.xlu1 %185 }
  0x8b   :  { %v119_v46 = vrot.slane %v118_v44, 4  ;;  %v127_v47 = vrot.slane %v126_v45, 4 }
  0x8d   :  { %v120_v48 = vadd.f32 %v119_v46, %v118_v44  ;;  %v128_v49 = vadd.f32 %v127_v47, %v126_v45  ;;  %v181_v34 = vpop.permute.xlu0 %180 }
  0x8f   :  { %v121_v50 = vrot.slane %v120_v48, 2  ;;  %v129_v51 = vrot.slane %v128_v49, 2  ;;  %v202_v36 = vpop.permute.xlu1 %201 }
  0x91   :  { %v122_v52 = vadd.f32 %v121_v50, %v120_v48  ;;  %v130_v53 = vadd.f32 %v129_v51, %v128_v49 }
  0x92   :  { %v218_v44 = vpop.permute.xlu0 %217 }
  0x93   :  { %v123_v54 = vrot.slane %v122_v52, 1  ;;  %v131_v55 = vrot.slane %v130_v53, 1 }
  0x94   :  { %v234_v51 = vpop.permute.xlu1 %233 }
  0x95   :  { %v124_v56 = vadd.f32 %v123_v54, %v122_v52  ;;  %v132_v57 = vadd.f32 %v131_v55, %v130_v53 }
  0x97   :  { %v134_v58 = vmul.f32 0.25, %v124_v56  ;;  %v135_v59 = vmul.f32 0.25, %v132_v57 }
  0x99   :  { %v136_v60 = vsub.f32 %v111_v42, %v134_v58  ;;  %v137_v61 = vsub.f32 %v112_v43, %v135_v59 }
  0x9b   :  { %v138_v62 = vmul.f32 %v136_v60, %v136_v60  ;;  %v139_v63 = vmul.f32 %v137_v61, %v137_v61 }
  0x9d   :  { %v140_v0 = vsel %vm117_vm0, %v138_v62, 0.0  ;;  %v147_v1 = vsel %vm125_vm1, %v139_v63, 0.0 }
  0x9e   :  { %v141_v2 = vrot.slane %v140_v0, 4  ;;  %v148_v3 = vrot.slane %v147_v1, 4 }
  0xa0   :  { %v142_v4 = vadd.f32 %v141_v2, %v140_v0  ;;  %v149_v5 = vadd.f32 %v148_v3, %v147_v1 }
  0xa2   :  { %v143_v6 = vrot.slane %v142_v4, 2  ;;  %v150_v7 = vrot.slane %v149_v5, 2 }
  0xa4   :  { %v144_v8 = vadd.f32 %v143_v6, %v142_v4  ;;  %v151_v9 = vadd.f32 %v150_v7, %v149_v5 }
  0xa6   :  { %v145_v10 = vrot.slane %v144_v8, 1  ;;  %v152_v11 = vrot.slane %v151_v9, 1 }
  0xa8   :  { %v146_v12 = vadd.f32 %v145_v10, %v144_v8  ;;  %v153_v13 = vadd.f32 %v152_v11, %v151_v9 }
  0xaa   :  { %v154_v14 = vmul.f32 0.25, %v146_v12  ;;  %v155_v15 = vmul.f32 0.25, %v153_v13 }
  0xac   :  { %v156_v16 = vadd.f32 1e-05, %v154_v14  ;;  %v157_v17 = vadd.f32 1e-05, %v155_v15 }
  0xae   :  { %555 = vrsqrt.f32 %v156_v16 }
  0xaf   :  { %557 = vrsqrt.f32 %v157_v17 }
  0xb8   :  { %v556_v19 = vpop.eup %555 }
  0xb9   :  { %v558_v24 = vpop.eup %557  ;;  %v160_v25 = vmul.f32 %v556_v19, %v136_v60 }
  0xba   :  { %v161_v27 = vmul.f32 %v558_v24, %v137_v61 }
  0xbb   :  { %v167_v29 = vmul.f32 %v165_v18, %v160_v25 }
  0xbc   :  { %v168_v30 = vmul.f32 %v165_v18, %v161_v27 }
  0xbd   :  { %v174_v31 = vadd.f32 %v172_v26, %v167_v29 }
  0xbe   :  { %v175_v32 = vadd.f32 %v172_v26, %v168_v30 }
  0xbf   :  { %v176_v33 = vmax.f32 %v174_v31, 0.0 }
  0xc0   :  { %v177_v35 = vmax.f32 %v175_v32, 0.0 }
  0xc1   :  { %v191_v37 = vrot.slane %v176_v33, %v718_v20  ;;  %v207_v38 = vrot.slane %v176_v33, %v722_v22  ;;  %v223_v42 = vrot.slane %v176_v33, %v720_v21  ;;  %v239_v48 = vrot.slane %v176_v33, %v724_v23 }
  0xc2   :  { %v195_v39 = vrot.slane %v177_v35, %v718_v20  ;;  %v211_v40 = vrot.slane %v177_v35, %v722_v22  ;;  %v227_v45 = vrot.slane %v177_v35, %v720_v21  ;;  %v243_v52 = vrot.slane %v177_v35, %v724_v23 }
  0xc3   :  { %v196_v41 = vmul.f32 %v191_v37, %v186_v28  ;;  %v212_v47 = vmul.f32 %v207_v38, %v202_v36  ;;  %v228_v54 = vmul.f32 %v223_v42, %v218_v44  ;;  %v244_v57 = vmul.f32 %v239_v48, %v234_v51 }
  0xc4   :  { %v197_v43 = vmul.f32 %v195_v39, %v186_v28  ;;  %v213_v50 = vmul.f32 %v211_v40, %v202_v36  ;;  %v229_v56 = vmul.f32 %v227_v45, %v218_v44  ;;  %v245_v59 = vmul.f32 %v243_v52, %v234_v51 }
  0xc5   :  { %v198_v46 = vadd.f32 %v196_v41, %v181_v34  ;;  %v297_v41 = vpop.permute.xlu1 %296 }
  0xc6   :  { %v199_v49 = vadd.f32 %v197_v43, %v181_v34 }
  0xc7   :  { %v214_v53 = vadd.f32 %v212_v47, %v198_v46  ;;  %v304_v47 = vpop.permute.xlu0 %303 }
  0xc8   :  { %v215_v55 = vadd.f32 %v213_v50, %v199_v49 }
  0xc9   :  { %v230_v58 = vadd.f32 %v228_v54, %v214_v53  ;;  %v318_v42 = vpop.permute.xlu1 %317 }
  0xca   :  { %v231_v60 = vadd.f32 %v229_v56, %v215_v55 }
  0xcb   :  { %v246_v61 = vadd.f32 %v244_v57, %v230_v58  ;;  %v334_v58 = vpop.permute.xlu0 %333 }
  0xcc   :  { %v247_v62 = vadd.f32 %v245_v59, %v231_v60 }
  0xcd   :  { %v252_v63 = vsel %vm117_vm0, %v246_v61, 0.0  ;;  %v313_v50 = vpop.permute.xlu1 %312 }
  0xce   :  { %v253_v0 = vrot.slane %v252_v63, 4  ;;  %v259_v1 = vsel %vm125_vm1, %v247_v62, 0.0 }
  0xcf   :  { %v260_v2 = vrot.slane %v259_v1, 4 }
  0xd0   :  { %v254_v3 = vadd.f32 %v253_v0, %v252_v63 }
  0xd1   :  { %v261_v4 = vadd.f32 %v260_v2, %v259_v1  ;;  %v350_v55 = vpop.permute.xlu1 %349 }
  0xd2   :  { %v255_v5 = vrot.slane %v254_v3, 2 }
  0xd3   :  { %v262_v6 = vrot.slane %v261_v4, 2 }
  0xd4   :  { %v256_v7 = vadd.f32 %v255_v5, %v254_v3 }
  0xd5   :  { %v263_v8 = vadd.f32 %v262_v6, %v261_v4  ;;  %v366_v4 = vpop.permute.xlu1 %365 }
  0xd6   :  { %v257_v9 = vrot.slane %v256_v7, 1 }
  0xd7   :  { %v264_v10 = vrot.slane %v263_v8, 1 }
  0xd8   :  { %v258_v11 = vadd.f32 %v257_v9, %v256_v7 }
  0xd9   :  { %v265_v12 = vadd.f32 %v264_v10, %v263_v8 }
  0xda   :  { %v266_v13 = vmul.f32 0.25, %v258_v11 }
  0xdb   :  { %v267_v14 = vmul.f32 0.25, %v265_v12 }
  0xdc   :  { %v268_v15 = vsub.f32 %v246_v61, %v266_v13 }
  0xdd   :  { %v269_v16 = vsub.f32 %v247_v62, %v267_v14 }
  0xde   :  { %v270_v17 = vmul.f32 %v268_v15, %v268_v15 }
  0xdf   :  { %v271_v18 = vmul.f32 %v269_v16, %v269_v16 }
  0xe0   :  { %v272_v19 = vsel %vm117_vm0, %v270_v17, 0.0 }
  0xe1   :  { %v273_v24 = vrot.slane %v272_v19, 4  ;;  %v279_v25 = vsel %vm125_vm1, %v271_v18, 0.0 }
  0xe2   :  { %v280_v26 = vrot.slane %v279_v25, 4 }
  0xe3   :  { %v274_v27 = vadd.f32 %v273_v24, %v272_v19 }
  0xe4   :  { %v281_v28 = vadd.f32 %v280_v26, %v279_v25 }
  0xe5   :  { %v275_v29 = vrot.slane %v274_v27, 2 }
  0xe6   :  { %v282_v30 = vrot.slane %v281_v28, 2 }
  0xe7   :  { %v276_v31 = vadd.f32 %v275_v29, %v274_v27 }
  0xe8   :  { %v283_v32 = vadd.f32 %v282_v30, %v281_v28 }
  0xe9   :  { %v277_v33 = vrot.slane %v276_v31, 1 }
  0xea   :  { %v284_v34 = vrot.slane %v283_v32, 1 }
  0xeb   :  { %v278_v35 = vadd.f32 %v277_v33, %v276_v31 }
  0xec   :  { %v285_v36 = vadd.f32 %v284_v34, %v283_v32 }
  0xed   :  { %v286_v37 = vmul.f32 0.25, %v278_v35 }
  0xee   :  { %v287_v38 = vmul.f32 0.25, %v285_v36 }
  0xef   :  { %v288_v39 = vadd.f32 1e-05, %v286_v37 }
  0xf0   :  { %v289_v40 = vadd.f32 1e-05, %v287_v38 }
  0xf1   :  { %559 = vrsqrt.f32 %v288_v39 }
  0xf2   :  { %561 = vrsqrt.f32 %v289_v40 }
  0xfb   :  { %v560_v43 = vpop.eup %559 }
  0xfc   :  { %v562_v44 = vpop.eup %561  ;;  %v292_v45 = vmul.f32 %v560_v43, %v268_v15 }
  0xfd   :  { %v293_v46 = vmul.f32 %v562_v44, %v269_v16 }
  0xfe   :  { %v299_v48 = vmul.f32 %v297_v41, %v292_v45 }
  0xff   :  { %v300_v49 = vmul.f32 %v297_v41, %v293_v46 }
 0x100   :  { %v306_v51 = vadd.f32 %v304_v47, %v299_v48 }
 0x101   :  { %v307_v52 = vadd.f32 %v304_v47, %v300_v49 }
 0x102   :  { %v308_v53 = vmax.f32 %v306_v51, 0.0 }
 0x103   :  { %v309_v54 = vmax.f32 %v307_v52, 0.0 }
 0x104   :  { %v323_v56 = vrot.slane %v308_v53, %v718_v20  ;;  %v339_v57 = vrot.slane %v308_v53, %v722_v22  ;;  %v355_v61 = vrot.slane %v308_v53, %v720_v21  ;;  %v371_v1 = vrot.slane %v308_v53, %v724_v23 }
 0x105   :  { %v327_v59 = vrot.slane %v309_v54, %v718_v20  ;;  %v343_v60 = vrot.slane %v309_v54, %v722_v22  ;;  %v359_v63 = vrot.slane %v309_v54, %v720_v21  ;;  %v375_v5 = vrot.slane %v309_v54, %v724_v23 }
 0x106   :  { %v328_v62 = vmul.f32 %v323_v56, %v318_v42  ;;  %v344_v3 = vmul.f32 %v339_v57, %v334_v58  ;;  %v360_v8 = vmul.f32 %v355_v61, %v350_v55  ;;  %v376_v12 = vmul.f32 %v371_v1, %v366_v4 }
 0x107   :  { %v329_v0 = vmul.f32 %v327_v59, %v318_v42  ;;  %v345_v7 = vmul.f32 %v343_v60, %v334_v58  ;;  %v361_v10 = vmul.f32 %v359_v63, %v350_v55  ;;  %v377_v14 = vmul.f32 %v375_v5, %v366_v4  ;;  %v436_v60 = vpop.permute.xlu1 %435 }
 0x108   :  { %v330_v2 = vadd.f32 %v328_v62, %v313_v50 }
 0x109   :  { %v331_v6 = vadd.f32 %v329_v0, %v313_v50  ;;  %v429_v0 = vpop.permute.xlu0 %428 }
 0x10a   :  { %v346_v9 = vadd.f32 %v344_v3, %v330_v2 }
 0x10b   :  { %v347_v11 = vadd.f32 %v345_v7, %v331_v6  ;;  %v450_v2 = vpop.permute.xlu1 %449 }
 0x10c   :  { %v362_v13 = vadd.f32 %v360_v8, %v346_v9 }
 0x10d   :  { %v363_v15 = vadd.f32 %v361_v10, %v347_v11  ;;  %v445_v9 = vpop.permute.xlu0 %444 }
 0x10e   :  { %v378_v16 = vadd.f32 %v376_v12, %v362_v13 }
 0x10f   :  { %v379_v17 = vadd.f32 %v377_v14, %v363_v15  ;;  %v466_v10 = vpop.permute.xlu1 %465 }
 0x110   :  { %v384_v18 = vsel %vm117_vm0, %v378_v16, 0.0 }
 0x111   :  { %v385_v19 = vrot.slane %v384_v18, 4  ;;  %v391_v24 = vsel %vm125_vm1, %v379_v17, 0.0 }
 0x112   :  { %v392_v25 = vrot.slane %v391_v24, 4 }
 0x113   :  { %v386_v26 = vadd.f32 %v385_v19, %v384_v18  ;;  %v482_v18 = vpop.permute.xlu0 %481 }
 0x114   :  { %v393_v27 = vadd.f32 %v392_v25, %v391_v24 }
 0x115   :  { %v387_v28 = vrot.slane %v386_v26, 2 }
 0x116   :  { %v394_v29 = vrot.slane %v393_v27, 2 }
 0x117   :  { %v388_v30 = vadd.f32 %v387_v28, %v386_v26 }
 0x118   :  { %v395_v31 = vadd.f32 %v394_v29, %v393_v27  ;;  %v498_v29 = vpop.permute.xlu1 %497 }
 0x119   :  { %v389_v32 = vrot.slane %v388_v30, 1 }
 0x11a   :  { %v396_v33 = vrot.slane %v395_v31, 1 }
 0x11b   :  { %v390_v34 = vadd.f32 %v389_v32, %v388_v30 }
 0x11c   :  { %v397_v35 = vadd.f32 %v396_v33, %v395_v31 }
 0x11d   :  { %v398_v36 = vmul.f32 0.25, %v390_v34 }
 0x11e   :  { %v399_v37 = vmul.f32 0.25, %v397_v35 }
 0x11f   :  { %v400_v38 = vsub.f32 %v378_v16, %v398_v36 }
 0x120   :  { %v401_v39 = vsub.f32 %v379_v17, %v399_v37 }
 0x121   :  { %v402_v40 = vmul.f32 %v400_v38, %v400_v38 }
 0x122   :  { %v403_v41 = vmul.f32 %v401_v39, %v401_v39 }
 0x123   :  { %v404_v42 = vsel %vm117_vm0, %v402_v40, 0.0 }
 0x124   :  { %v405_v43 = vrot.slane %v404_v42, 4  ;;  %v411_v44 = vsel %vm125_vm1, %v403_v41, 0.0 }
 0x125   :  { %v412_v45 = vrot.slane %v411_v44, 4 }
 0x126   :  { %v406_v46 = vadd.f32 %v405_v43, %v404_v42 }
 0x127   :  { %v413_v47 = vadd.f32 %v412_v45, %v411_v44 }
 0x128   :  { %v407_v48 = vrot.slane %v406_v46, 2 }
 0x129   :  { %v414_v49 = vrot.slane %v413_v47, 2 }
 0x12a   :  { %v408_v50 = vadd.f32 %v407_v48, %v406_v46 }
 0x12b   :  { %v415_v51 = vadd.f32 %v414_v49, %v413_v47 }
 0x12c   :  { %v409_v52 = vrot.slane %v408_v50, 1 }
 0x12d   :  { %v416_v53 = vrot.slane %v415_v51, 1 }
 0x12e   :  { %v410_v54 = vadd.f32 %v409_v52, %v408_v50 }
 0x12f   :  { %v417_v55 = vadd.f32 %v416_v53, %v415_v51 }
 0x130   :  { %v418_v56 = vmul.f32 0.25, %v410_v54 }
 0x131   :  { %v419_v57 = vmul.f32 0.25, %v417_v55 }
 0x132   :  { %v420_v58 = vadd.f32 1e-05, %v418_v56 }
 0x133   :  { %v421_v59 = vadd.f32 1e-05, %v419_v57 }
 0x134   :  { %563 = vrsqrt.f32 %v420_v58 }
 0x135   :  { %565 = vrsqrt.f32 %v421_v59 }
 0x13e   :  { %v564_v61 = vpop.eup %563 }
 0x13f   :  { %v566_v62 = vpop.eup %565  ;;  %v424_v63 = vmul.f32 %v564_v61, %v400_v38 }
 0x140   :  { %v425_v1 = vmul.f32 %v566_v62, %v401_v39 }
 0x141   :  { %v431_v3 = vmul.f32 %v429_v0, %v424_v63 }
 0x142   :  { %v432_v4 = vmul.f32 %v429_v0, %v425_v1 }
 0x143   :  { %v438_v5 = vadd.f32 %v436_v60, %v431_v3 }
 0x144   :  { %v439_v6 = vadd.f32 %v436_v60, %v432_v4 }
 0x145   :  { %v440_v7 = vmax.f32 %v438_v5, 0.0 }
 0x146   :  { %v441_v8 = vmax.f32 %v439_v6, 0.0 }
 0x147   :  { %v455_v11 = vrot.slane %v440_v7, %v718_v20  ;;  %v471_v12 = vrot.slane %v440_v7, %v722_v22  ;;  %v487_v16 = vrot.slane %v440_v7, %v720_v21  ;;  %v503_v26 = vrot.slane %v440_v7, %v724_v23 }
 0x148   :  { %v459_v13 = vrot.slane %v441_v8, %v718_v20  ;;  %v475_v14 = vrot.slane %v441_v8, %v722_v22  ;;  %v491_v19 = vrot.slane %v441_v8, %v720_v21  ;;  %v507_v30 = vrot.slane %v441_v8, %v724_v23 }
 0x149   :  { %v460_v15 = vmul.f32 %v455_v11, %v450_v2  ;;  %v476_v25 = vmul.f32 %v471_v12, %v466_v10  ;;  %v492_v20 = vmul.f32 %v487_v16, %v482_v18  ;;  %v508_v33 = vmul.f32 %v503_v26, %v498_v29 }
 0x14a   :  { %v461_v17 = vmul.f32 %v459_v13, %v450_v2  ;;  %v477_v28 = vmul.f32 %v475_v14, %v466_v10  ;;  %v493_v22 = vmul.f32 %v491_v19, %v482_v18  ;;  %v509_v35 = vmul.f32 %v507_v30, %v498_v29 }
 0x14b   :  { %v462_v24 = vadd.f32 %v460_v15, %v445_v9 }
 0x14c   :  { %v463_v27 = vadd.f32 %v461_v17, %v445_v9 }
 0x14d   :  { %v478_v31 = vadd.f32 %v476_v25, %v462_v24 }
 0x14e   :  { %v479_v32 = vadd.f32 %v477_v28, %v463_v27 }
 0x14f   :  { %v494_v34 = vadd.f32 %v492_v20, %v478_v31 }
 0x150   :  { %v495_v36 = vadd.f32 %v493_v22, %v479_v32 }
 0x151   :  { %v510_v37 = vadd.f32 %v508_v33, %v494_v34 }
 0x152   :  { %v511_v21 = vadd.f32 %v509_v35, %v495_v36 }
 0x154   :  { %v514_v38 = vcombine.low %v510_v37, %v511_v21 }
 0x156   :  { %518 = vst.msk [vmem:[#allocation2] sm:$0xff] %vm517_vm3, %v514_v38 }
 0x157   :  { %578 = shalt.err (!%p575_p4)
}
 0x158   :  { %s579_s23 = scalar_lea.hbm %s801_s15, 128 }
 0x159   :  { %p580_p5 = scmp.ne.s32.totalorder %s801_s15, %s579_s23  ;;  %p583_p6 = scmp.lt.u32.totalorder %s579_s23, %s801_s15 }
 0x15b   :  { %p585_p7 = pnand %p583_p6, %p580_p5 }
 0x15d   :  { %588 = shalt.err (!%p585_p7)
}
 0x15e   :  { %528 = dma.vmem_to_hbm [thread:$0]  %s526_s13, 128, %s801_s15, [#allocation3]  }
 0x15f   :  { %589 = dma.done.wait [#allocation3], 128  }
 0x160   :  { %590 = vsyncadd [#allocation3], 4294967168 }
 0x161   :  { %532 = vsyncpa [#allocation3], 1 }

</bundles_post_ra>
